<compile_context>
chip_gen: v5e
topology: v5e:2x2
jax: 0.10.0
libtpu: 0.0.40
codegen_flags: <defaults>
</compile_context>

<pallas_src>
import jax
import jax.numpy as jnp
from jax.experimental import pallas as pl
from jax.experimental.pallas import tpu as pltpu

SEQ = 8      # nx : length so that 3x (conv k=2 pad=1 -> maxpool(2,2)) ends at L=1
C_IN = 201   # ny : conv1 in_channels (fixed by the module)
CPAD = 128   # every conv layer's channel count is carried zero-padded to 128 lanes


def net_kernel(x_ref,
               w1_ref, w2_ref, w3_ref, bc_ref,
               fw1_ref, fb1_ref, fw2_ref, fb2_ref,
               o_ref):
    bc = bc_ref[...]                                   # (3, 128) conv biases (zero-padded)

    def conv_relu_pool(h, w_ref, b):
        """Conv1d(k=2, pad=1) + ReLU + MaxPool1d(2,2) on a position-major tile.

        h: (L, Bt, Cin) activations;  w_ref: (Cin, 256) = [tap0 | tap1], each tap
        zero-padded to a 128-lane half;  b: (1, 128) zero-padded bias.
        Returns (L//2, Bt, 128).
        """
        L, bt, cin = h.shape
        # Single MXU dot for all positions and both taps (leading-dim merge is free).
        hs = h.reshape(L * bt, cin).astype(w_ref.dtype)
        out = jnp.dot(hs, w_ref[...], preferred_element_type=jnp.float32)
        out = out.reshape(L, bt, 2 * CPAD)
        da = out[:, :, :CPAD]          # tap k=0 per position (128-lane aligned slice)
        db = out[:, :, CPAD:]          # tap k=1 per position
        # Conv output length is L+1 (odd): the floor-mode pool drops the last conv
        # row, so only rows p = 0..L-1 are assembled:
        #   y[0] = db[0] + b ;   y[p] = da[p-1] + db[p] + b   for p = 1..L-1
        # (da[L-1] is computed inside the packed dot but never used — free.)
        y = jnp.concatenate([db[0:1], da[:L - 1] + db[1:]], axis=0) + b
        y = jnp.maximum(y, 0.0)                                    # ReLU
        return y.reshape(L // 2, 2, bt, CPAD).max(axis=1)          # MaxPool1d(2, 2)

    h = x_ref[...]                                     # (8, Bt, 201)
    h = conv_relu_pool(h, w1_ref, bc[0:1])             # (4, Bt, 128)  (100 real lanes)
    h = conv_relu_pool(h, w2_ref, bc[1:2])             # (2, Bt, 128)  ( 50 real lanes)
    h = conv_relu_pool(h, w3_ref, bc[2:3])             # (1, Bt, 128)  ( 25 real lanes)
    h = h[0]                                           # (Bt, 128) == torch flatten (padded)

    # fc1: transposed-RHS dot puts the batch on the lane axis -> (10, Bt);
    # fw1's zero-padded columns cancel h's zero-padded lanes exactly.
    z1 = jnp.einsum('jc,bc->jb', fw1_ref[...], h,
                    preferred_element_type=jnp.float32) + fb1_ref[...]
    h1 = jnp.maximum(z1, 0.0)
    # fc2 (10 -> 1): broadcast-multiply + sublane reduce -> (1, Bt)
    z2 = jnp.sum(h1 * fw2_ref[...], axis=0, keepdims=True) + fb2_ref[...]
    y = jnp.maximum(z2, 0.0)
    # Exact f32 sigmoid (keeps the 1e-5 check vs. the reference; a
    # pl.reciprocal(..., approx=True) EUP variant is a further free win at ~1e-3 tol).
    o_ref[...] = (1.0 / (1.0 + jnp.exp(-y)))[None]     # lane-dense (1, 1, Bt) store


def _pack_conv(W, b, cin_pad, dtype):
    """Pack a torch Conv1d weight (C_out, C_in, 2) + bias (C_out,) for the kernel.

    Returns wcat (cin_pad, 256) with tap k=0 in lanes [0,128) and tap k=1 in
    lanes [128,256) (each zero-padded), and the bias zero-padded to (128,)."""
    cout, cin, _ = W.shape
    wa = jnp.zeros((cin_pad, CPAD), jnp.float32).at[:cin, :cout].set(W[:, :, 0].T)
    wb = jnp.zeros((cin_pad, CPAD), jnp.float32).at[:cin, :cout].set(W[:, :, 1].T)
    wcat = jnp.concatenate([wa, wb], axis=1).astype(dtype)
    bp = jnp.zeros((CPAD,), jnp.float32).at[:cout].set(b)
    return wcat, bp


def pack_params(raw, *, use_bf16=False):
    """Host-side packing of torch-layout params into the kernel's 8 weight refs."""
    wdt = jnp.bfloat16 if use_bf16 else jnp.float32
    w1, b1 = _pack_conv(raw['W1'], raw['b1'], C_IN, wdt)    # (201, 256)
    w2, b2 = _pack_conv(raw['W2'], raw['b2'], CPAD, wdt)    # (128, 256)
    w3, b3 = _pack_conv(raw['W3'], raw['b3'], CPAD, wdt)    # (128, 256)
    bconv = jnp.stack([b1, b2, b3], axis=0)                 # (3, 128), f32
    fw1 = jnp.zeros((10, CPAD), jnp.float32).at[:, :25].set(raw['FW1'])
    fb1 = raw['fb1'].reshape(10, 1).astype(jnp.float32)
    fw2 = raw['FW2'].reshape(1, 10).T.astype(jnp.float32)   # (10, 1)
    fb2 = raw['fb2'].reshape(1, 1).astype(jnp.float32)
    return (w1, w2, w3, bconv, fw1, fb1, fw2, fb2)


def net_forward(x, raw_params, *, block_n=512, use_bf16=False):
    """Forward pass of `Net` for x of shape (nsamples, nx=8, ny=201)."""
    N, nx, ny = x.shape
    assert (nx, ny) == (SEQ, C_IN)
    kparams = pack_params(raw_params, use_bf16=use_bf16)
    in_dtype = jnp.bfloat16 if use_bf16 else jnp.float32

    # Exactly as in PyTorch: raw reshape (N, nx, ny) -> (N, ny, nx) (NOT a
    # transpose), giving Conv1d NCL layout; then go position-major (L, N, C).
    x_ncl = x.reshape(N, ny, nx).astype(in_dtype)
    x_pos = jnp.transpose(x_ncl, (2, 0, 1))                      # (SEQ, N, C_IN)
    # TODO(synk): this standalone transpose is one extra HBM pass over the input;
    # ideally the producer emits (SEQ, N, C_IN) directly (bf16 already halves it).

    mult = 16                         # bf16 sublane packing; also a multiple of 8 for f32
    bn = int(block_n)
    if N > mult:
        # Keep >= 2 balanced batch tiles so the "parallel" grid axis can shard
        # across TensorCores (v7x megacore); harmless on single-core chips.
        bn = min(bn, pl.cdiv(pl.cdiv(N, 2), mult) * mult)
    bn = max(mult, min(bn, pl.cdiv(N, mult) * mult))
    n_pad = pl.cdiv(N, bn) * bn
    if n_pad != N:
        x_pos = jnp.pad(x_pos, ((0, 0), (0, n_pad - N), (0, 0)))
    num_tiles = n_pad // bn

    w_specs = [pl.BlockSpec(p.shape, lambda i: (0, 0)) for p in kparams]
    out = pl.pallas_call(
        net_kernel,
        out_shape=jax.ShapeDtypeStruct((num_tiles, 1, bn), jnp.float32),
        grid=(num_tiles,),
        in_specs=[pl.BlockSpec((SEQ, bn, C_IN), lambda i: (0, i, 0))] + w_specs,
        out_specs=pl.BlockSpec((1, 1, bn), lambda i: (i, 0, 0)),
        compiler_params=pltpu.CompilerParams(
            dimension_semantics=("parallel",),        # shard batch tiles across TCs (v7x)
            vmem_limit_bytes=48 * 1024 * 1024,        # within v7x's 64 MiB physical VMEM
        ),
    )(x_pos, *kparams)
    return out.reshape(-1)[:N].reshape(N, 1)


def ref_forward(x, raw):
    """Pure-JAX f32 reference of the PyTorch forward (for the correctness check)."""
    N, nx, ny = x.shape
    h = jnp.transpose(x.reshape(N, ny, nx), (0, 2, 1))           # (N, L, C) channels-last

    def block(h, W, b):
        Nb, L, C = h.shape
        wa, wb = W[:, :, 0].T, W[:, :, 1].T                      # (C_in, C_out)
        z = jnp.zeros((Nb, 1, C), h.dtype)
        hp = jnp.concatenate([z, h, z], axis=1)
        lout = L + 1
        y = hp[:, :lout] @ wa + hp[:, 1:lout + 1] @ wb + b
        y = jnp.maximum(y, 0.0)
        lp = lout // 2
        return y[:, :2 * lp].reshape(Nb, lp, 2, -1).max(axis=2)

    h = block(h, raw['W1'], raw['b1'])
    h = block(h, raw['W2'], raw['b2'])
    h = block(h, raw['W3'], raw['b3'])
    h = h.reshape(N, -1)                                         # (N, 25)
    h = jnp.maximum(h @ raw['FW1'].T + raw['fb1'], 0.0)          # (N, 10)
    y = jnp.maximum(h @ raw['FW2'].T + raw['fb2'], 0.0)          # (N, 1)
    return 1.0 / (1.0 + jnp.exp(-y))


def make_params(key):
    """Deterministic synthetic parameters matching the nn.Module shapes (torch layout)."""
    ks = jax.random.split(key, 10)

    def u(k, shape, fan_in):
        bound = 1.0 / (fan_in ** 0.5)
        return jax.random.uniform(k, shape, jnp.float32, -bound, bound)

    return dict(
        W1=u(ks[0], (100, 201, 2), 201 * 2), b1=u(ks[1], (100,), 201 * 2),
        W2=u(ks[2], (50, 100, 2), 100 * 2),  b2=u(ks[3], (50,), 100 * 2),
        W3=u(ks[4], (25, 50, 2), 50 * 2),    b3=u(ks[5], (25,), 50 * 2),
        FW1=u(ks[6], (10, 25), 25),          fb1=u(ks[7], (10,), 25),
        FW2=u(ks[8], (1, 10), 10),           fb2=u(ks[9], (1,), 10),
    )
    # TODO(synk): nn.Dropout(0.1) is defined but never used in forward(); omitted.


if __name__ == "__main__":
    key = jax.random.PRNGKey(0)
    kx, kp = jax.random.split(key)
    kx1, kx2 = jax.random.split(kx)
    raw = make_params(kp)

    # input shape (nsamples, nx, ny) = (2, 8, 201) — small demo shape
    x = jax.random.normal(kx1, (2, SEQ, C_IN), dtype=jnp.float32)
    out = jax.block_until_ready(net_forward(x, raw))
    ref = jax.block_until_ready(ref_forward(x, raw))
    assert out.shape == (2, 1)
    assert jnp.allclose(out, ref, atol=1e-5, rtol=1e-5), (out, ref)

    # second check: multiple grid tiles + batch padding + "parallel" grid axis
    x2 = jax.random.normal(kx2, (20, SEQ, C_IN), dtype=jnp.float32)
    out2 = jax.block_until_ready(net_forward(x2, raw, block_n=16))
    ref2 = jax.block_until_ready(ref_forward(x2, raw))
    assert out2.shape == (20, 1)
    assert jnp.allclose(out2, ref2, atol=1e-5, rtol=1e-5), (out2, ref2)

    # third check: bf16 MXU / halved-HBM path (deliberately looser tolerance)
    out3 = jax.block_until_ready(net_forward(x2, raw, use_bf16=True))
    assert out3.shape == (20, 1)
    assert jnp.allclose(out3, ref2, atol=5e-2, rtol=5e-2), (out3, ref2)

    print("KERNEL_OK")
</pallas_src>

<mosaic_0001>
module attributes {stable_mosaic.version = 11 : i64} {
  func.func @net_kernel(%arg0: i32, %arg1: memref<8x16x201xf32, #tpu.memory_space<vmem>>, %arg2: memref<201x256xf32, #tpu.memory_space<vmem>>, %arg3: memref<128x256xf32, #tpu.memory_space<vmem>>, %arg4: memref<128x256xf32, #tpu.memory_space<vmem>>, %arg5: memref<3x128xf32, #tpu.memory_space<vmem>>, %arg6: memref<10x128xf32, #tpu.memory_space<vmem>>, %arg7: memref<10x1xf32, #tpu.memory_space<vmem>>, %arg8: memref<10x1xf32, #tpu.memory_space<vmem>>, %arg9: memref<1x1xf32, #tpu.memory_space<vmem>>, %arg10: memref<1x1x16xf32, #tpu.memory_space<vmem>>) attributes {dimension_semantics = [#tpu.dimension_semantics<parallel>], iteration_bounds = array<i64: 1>, scalar_prefetch = 0 : i64, scratch_operands = 0 : i64, tpu.core_type = #tpu.core_type<tc>, window_params = [{transform_indices = @transform_0, window_bounds = array<i64: 8, 16, 201>}, {pipeline_mode = #tpu.pipeline_mode<synchronous>, transform_indices = @transform_1, window_bounds = array<i64: 201, 256>}, {pipeline_mode = #tpu.pipeline_mode<synchronous>, transform_indices = @transform_2, window_bounds = array<i64: 128, 256>}, {pipeline_mode = #tpu.pipeline_mode<synchronous>, transform_indices = @transform_3, window_bounds = array<i64: 128, 256>}, {pipeline_mode = #tpu.pipeline_mode<synchronous>, transform_indices = @transform_4, window_bounds = array<i64: 3, 128>}, {pipeline_mode = #tpu.pipeline_mode<synchronous>, transform_indices = @transform_5, window_bounds = array<i64: 10, 128>}, {pipeline_mode = #tpu.pipeline_mode<synchronous>, transform_indices = @transform_6, window_bounds = array<i64: 10, 1>}, {pipeline_mode = #tpu.pipeline_mode<synchronous>, transform_indices = @transform_7, window_bounds = array<i64: 10, 1>}, {pipeline_mode = #tpu.pipeline_mode<synchronous>, transform_indices = @transform_8, window_bounds = array<i64: 1, 1>}, {transform_indices = @transform_9, window_bounds = array<i64: 1, 1, 16>}]} {
    %c0 = arith.constant 0 : index
    %c0_0 = arith.constant 0 : index
    %0 = vector.load %arg5[%c0, %c0_0] : memref<3x128xf32, #tpu.memory_space<vmem>>, vector<3x128xf32>
    %c0_1 = arith.constant 0 : index
    %c0_2 = arith.constant 0 : index
    %c0_3 = arith.constant 0 : index
    %1 = vector.load %arg1[%c0_1, %c0_2, %c0_3] : memref<8x16x201xf32, #tpu.memory_space<vmem>>, vector<8x16x201xf32>
    %2 = vector.extract_strided_slice %0 {offsets = [0, 0], sizes = [1, 128], strides = [1, 1]} : vector<3x128xf32> to vector<1x128xf32>
    %3 = vector.shape_cast %1 : vector<8x16x201xf32> to vector<128x201xf32>
    %c0_4 = arith.constant 0 : index
    %c0_5 = arith.constant 0 : index
    %4 = vector.load %arg2[%c0_4, %c0_5] : memref<201x256xf32, #tpu.memory_space<vmem>>, vector<201x256xf32>
    %cst = arith.constant dense<0.000000e+00> : vector<128x256xf32>
    %5 = tpu.matmul %3, %4, %cst {dimension_numbers = #tpu.dot_dimension_numbers<[1], [0], [0], [1], [0, 0, 1, 1], [], []>} : vector<128x201xf32>, vector<201x256xf32>, vector<128x256xf32> -> vector<128x256xf32>
    %6 = vector.shape_cast %5 : vector<128x256xf32> to vector<8x16x256xf32>
    %7 = vector.extract_strided_slice %6 {offsets = [0, 0, 0], sizes = [8, 16, 128], strides = [1, 1, 1]} : vector<8x16x256xf32> to vector<8x16x128xf32>
    %8 = vector.extract_strided_slice %6 {offsets = [0, 0, 128], sizes = [8, 16, 128], strides = [1, 1, 1]} : vector<8x16x256xf32> to vector<8x16x128xf32>
    %9 = vector.extract_strided_slice %8 {offsets = [0, 0, 0], sizes = [1, 16, 128], strides = [1, 1, 1]} : vector<8x16x128xf32> to vector<1x16x128xf32>
    %10 = vector.extract_strided_slice %7 {offsets = [0, 0, 0], sizes = [7, 16, 128], strides = [1, 1, 1]} : vector<8x16x128xf32> to vector<7x16x128xf32>
    %11 = vector.extract_strided_slice %8 {offsets = [1, 0, 0], sizes = [7, 16, 128], strides = [1, 1, 1]} : vector<8x16x128xf32> to vector<7x16x128xf32>
    %12 = arith.addf %10, %11 : vector<7x16x128xf32>
    %13 = tpu.concatenate %9, %12 in 0 : vector<1x16x128xf32>, vector<7x16x128xf32> -> vector<8x16x128xf32>
    %14 = vector.shape_cast %2 : vector<1x128xf32> to vector<1x1x128xf32>
    %15 = vector.broadcast %14 : vector<1x1x128xf32> to vector<8x16x128xf32>
    %16 = arith.addf %13, %15 : vector<8x16x128xf32>
    %cst_6 = arith.constant 0.000000e+00 : f32
    %17 = vector.broadcast %cst_6 : f32 to vector<8x16x128xf32>
    %18 = arith.maximumf %16, %17 : vector<8x16x128xf32>
    %19 = vector.shape_cast %18 : vector<8x16x128xf32> to vector<4x2x16x128xf32>
    %cst_7 = arith.constant dense<0xFF800000> : vector<4x16x128xf32>
    %20 = vector.multi_reduction <maximumf>, %19, %cst_7 [1] : vector<4x2x16x128xf32> to vector<4x16x128xf32>
    %21 = vector.extract_strided_slice %0 {offsets = [1, 0], sizes = [1, 128], strides = [1, 1]} : vector<3x128xf32> to vector<1x128xf32>
    %22 = vector.shape_cast %20 : vector<4x16x128xf32> to vector<64x128xf32>
    %c0_8 = arith.constant 0 : index
    %c0_9 = arith.constant 0 : index
    %23 = vector.load %arg3[%c0_8, %c0_9] : memref<128x256xf32, #tpu.memory_space<vmem>>, vector<128x256xf32>
    %cst_10 = arith.constant dense<0.000000e+00> : vector<64x256xf32>
    %24 = tpu.matmul %22, %23, %cst_10 {dimension_numbers = #tpu.dot_dimension_numbers<[1], [0], [0], [1], [0, 0, 1, 1], [], []>} : vector<64x128xf32>, vector<128x256xf32>, vector<64x256xf32> -> vector<64x256xf32>
    %25 = vector.shape_cast %24 : vector<64x256xf32> to vector<4x16x256xf32>
    %26 = vector.extract_strided_slice %25 {offsets = [0, 0, 0], sizes = [4, 16, 128], strides = [1, 1, 1]} : vector<4x16x256xf32> to vector<4x16x128xf32>
    %27 = vector.extract_strided_slice %25 {offsets = [0, 0, 128], sizes = [4, 16, 128], strides = [1, 1, 1]} : vector<4x16x256xf32> to vector<4x16x128xf32>
    %28 = vector.extract_strided_slice %27 {offsets = [0, 0, 0], sizes = [1, 16, 128], strides = [1, 1, 1]} : vector<4x16x128xf32> to vector<1x16x128xf32>
    %29 = vector.extract_strided_slice %26 {offsets = [0, 0, 0], sizes = [3, 16, 128], strides = [1, 1, 1]} : vector<4x16x128xf32> to vector<3x16x128xf32>
    %30 = vector.extract_strided_slice %27 {offsets = [1, 0, 0], sizes = [3, 16, 128], strides = [1, 1, 1]} : vector<4x16x128xf32> to vector<3x16x128xf32>
    %31 = arith.addf %29, %30 : vector<3x16x128xf32>
    %32 = tpu.concatenate %28, %31 in 0 : vector<1x16x128xf32>, vector<3x16x128xf32> -> vector<4x16x128xf32>
    %33 = vector.shape_cast %21 : vector<1x128xf32> to vector<1x1x128xf32>
    %34 = vector.broadcast %33 : vector<1x1x128xf32> to vector<4x16x128xf32>
    %35 = arith.addf %32, %34 : vector<4x16x128xf32>
    %cst_11 = arith.constant 0.000000e+00 : f32
    %36 = vector.broadcast %cst_11 : f32 to vector<4x16x128xf32>
    %37 = arith.maximumf %35, %36 : vector<4x16x128xf32>
    %38 = vector.shape_cast %37 : vector<4x16x128xf32> to vector<2x2x16x128xf32>
    %cst_12 = arith.constant dense<0xFF800000> : vector<2x16x128xf32>
    %39 = vector.multi_reduction <maximumf>, %38, %cst_12 [1] : vector<2x2x16x128xf32> to vector<2x16x128xf32>
    %40 = vector.extract_strided_slice %0 {offsets = [2, 0], sizes = [1, 128], strides = [1, 1]} : vector<3x128xf32> to vector<1x128xf32>
    %41 = vector.shape_cast %39 : vector<2x16x128xf32> to vector<32x128xf32>
    %c0_13 = arith.constant 0 : index
    %c0_14 = arith.constant 0 : index
    %42 = vector.load %arg4[%c0_13, %c0_14] : memref<128x256xf32, #tpu.memory_space<vmem>>, vector<128x256xf32>
    %cst_15 = arith.constant dense<0.000000e+00> : vector<32x256xf32>
    %43 = tpu.matmul %41, %42, %cst_15 {dimension_numbers = #tpu.dot_dimension_numbers<[1], [0], [0], [1], [0, 0, 1, 1], [], []>} : vector<32x128xf32>, vector<128x256xf32>, vector<32x256xf32> -> vector<32x256xf32>
    %44 = vector.shape_cast %43 : vector<32x256xf32> to vector<2x16x256xf32>
    %45 = vector.extract_strided_slice %44 {offsets = [0, 0, 0], sizes = [2, 16, 128], strides = [1, 1, 1]} : vector<2x16x256xf32> to vector<2x16x128xf32>
    %46 = vector.extract_strided_slice %44 {offsets = [0, 0, 128], sizes = [2, 16, 128], strides = [1, 1, 1]} : vector<2x16x256xf32> to vector<2x16x128xf32>
    %47 = vector.extract_strided_slice %46 {offsets = [0, 0, 0], sizes = [1, 16, 128], strides = [1, 1, 1]} : vector<2x16x128xf32> to vector<1x16x128xf32>
    %48 = vector.extract_strided_slice %45 {offsets = [0, 0, 0], sizes = [1, 16, 128], strides = [1, 1, 1]} : vector<2x16x128xf32> to vector<1x16x128xf32>
    %49 = vector.extract_strided_slice %46 {offsets = [1, 0, 0], sizes = [1, 16, 128], strides = [1, 1, 1]} : vector<2x16x128xf32> to vector<1x16x128xf32>
    %50 = arith.addf %48, %49 : vector<1x16x128xf32>
    %51 = tpu.concatenate %47, %50 in 0 : vector<1x16x128xf32>, vector<1x16x128xf32> -> vector<2x16x128xf32>
    %52 = vector.shape_cast %40 : vector<1x128xf32> to vector<1x1x128xf32>
    %53 = vector.broadcast %52 : vector<1x1x128xf32> to vector<2x16x128xf32>
    %54 = arith.addf %51, %53 : vector<2x16x128xf32>
    %cst_16 = arith.constant 0.000000e+00 : f32
    %55 = vector.broadcast %cst_16 : f32 to vector<2x16x128xf32>
    %56 = arith.maximumf %54, %55 : vector<2x16x128xf32>
    %57 = vector.shape_cast %56 : vector<2x16x128xf32> to vector<1x2x16x128xf32>
    %cst_17 = arith.constant dense<0xFF800000> : vector<1x16x128xf32>
    %58 = vector.multi_reduction <maximumf>, %57, %cst_17 [1] : vector<1x2x16x128xf32> to vector<1x16x128xf32>
    %59 = vector.shape_cast %58 : vector<1x16x128xf32> to vector<16x128xf32>
    %c0_18 = arith.constant 0 : index
    %c0_19 = arith.constant 0 : index
    %60 = vector.load %arg6[%c0_18, %c0_19] : memref<10x128xf32, #tpu.memory_space<vmem>>, vector<10x128xf32>
    "tpu.trace_start"() <{level = 10 : i32, message = "jc,bc->jb"}> : () -> ()
    %cst_20 = arith.constant dense<0.000000e+00> : vector<10x16xf32>
    %61 = tpu.matmul %60, %59, %cst_20 {dimension_numbers = #tpu.dot_dimension_numbers<[1], [1], [0], [0], [0, 0, 1, 0], [], []>} : vector<10x128xf32>, vector<16x128xf32>, vector<10x16xf32> -> vector<10x16xf32>
    "tpu.trace_stop"() : () -> ()
    %c0_21 = arith.constant 0 : index
    %c0_22 = arith.constant 0 : index
    %62 = vector.load %arg7[%c0_21, %c0_22] : memref<10x1xf32, #tpu.memory_space<vmem>>, vector<10x1xf32>
    %63 = vector.broadcast %62 : vector<10x1xf32> to vector<10x16xf32>
    %64 = arith.addf %61, %63 : vector<10x16xf32>
    %cst_23 = arith.constant 0.000000e+00 : f32
    %65 = vector.broadcast %cst_23 : f32 to vector<10x16xf32>
    %66 = arith.maximumf %64, %65 : vector<10x16xf32>
    %c0_24 = arith.constant 0 : index
    %c0_25 = arith.constant 0 : index
    %67 = vector.load %arg8[%c0_24, %c0_25] : memref<10x1xf32, #tpu.memory_space<vmem>>, vector<10x1xf32>
    %68 = vector.broadcast %67 : vector<10x1xf32> to vector<10x16xf32>
    %69 = arith.mulf %66, %68 : vector<10x16xf32>
    %cst_26 = arith.constant dense<0.000000e+00> : vector<16xf32>
    %70 = vector.multi_reduction <add>, %69, %cst_26 [0] : vector<10x16xf32> to vector<16xf32>
    %71 = vector.shape_cast %70 : vector<16xf32> to vector<1x16xf32>
    %c0_27 = arith.constant 0 : index
    %c0_28 = arith.constant 0 : index
    %72 = vector.load %arg9[%c0_27, %c0_28] : memref<1x1xf32, #tpu.memory_space<vmem>>, vector<1x1xf32>
    %73 = vector.broadcast %72 : vector<1x1xf32> to vector<1x16xf32>
    %74 = arith.addf %71, %73 : vector<1x16xf32>
    %cst_29 = arith.constant 0.000000e+00 : f32
    %75 = vector.broadcast %cst_29 : f32 to vector<1x16xf32>
    %76 = arith.maximumf %74, %75 : vector<1x16xf32>
    %cst_30 = arith.constant 0.000000e+00 : f32
    %77 = vector.broadcast %cst_30 : f32 to vector<1x16xf32>
    %78 = arith.subf %77, %76 : vector<1x16xf32>
    %79 = math.exp %78 : vector<1x16xf32>
    %cst_31 = arith.constant 1.000000e+00 : f32
    %80 = vector.broadcast %cst_31 : f32 to vector<1x16xf32>
    %81 = arith.addf %80, %79 : vector<1x16xf32>
    %cst_32 = arith.constant 1.000000e+00 : f32
    %82 = vector.broadcast %cst_32 : f32 to vector<1x16xf32>
    %83 = arith.divf %82, %81 : vector<1x16xf32>
    %84 = vector.shape_cast %83 : vector<1x16xf32> to vector<1x1x16xf32>
    %c0_33 = arith.constant 0 : index
    %c0_34 = arith.constant 0 : index
    %c0_35 = arith.constant 0 : index
    %85 = vector.load %arg10[%c0_33, %c0_34, %c0_35] : memref<1x1x16xf32, #tpu.memory_space<vmem>>, vector<1x1x16xf32>
    tpu.vector_store %arg10[%c0_33, %c0_34, %c0_35], %84 {strides = array<i32>} : memref<1x1x16xf32, #tpu.memory_space<vmem>>, vector<1x1x16xf32>,
    return
  }
  func.func @transform_0(%arg0: i32) -> (i32, i32, i32) {
    %c0_i32 = arith.constant 0 : i32
    %c0_i32_0 = arith.constant 0 : i32
    %c0_i32_1 = arith.constant 0 : i32
    return %c0_i32, %arg0, %c0_i32_0 : i32, i32, i32
  }
  func.func @transform_1(%arg0: i32) -> (i32, i32) {
    %c0_i32 = arith.constant 0 : i32
    %c0_i32_0 = arith.constant 0 : i32
    %c0_i32_1 = arith.constant 0 : i32
    return %c0_i32, %c0_i32_0 : i32, i32
  }
  func.func @transform_2(%arg0: i32) -> (i32, i32) {
    %c0_i32 = arith.constant 0 : i32
    %c0_i32_0 = arith.constant 0 : i32
    %c0_i32_1 = arith.constant 0 : i32
    return %c0_i32, %c0_i32_0 : i32, i32
  }
  func.func @transform_3(%arg0: i32) -> (i32, i32) {
    %c0_i32 = arith.constant 0 : i32
    %c0_i32_0 = arith.constant 0 : i32
    %c0_i32_1 = arith.constant 0 : i32
    return %c0_i32, %c0_i32_0 : i32, i32
  }
  func.func @transform_4(%arg0: i32) -> (i32, i32) {
    %c0_i32 = arith.constant 0 : i32
    %c0_i32_0 = arith.constant 0 : i32
    %c0_i32_1 = arith.constant 0 : i32
    return %c0_i32, %c0_i32_0 : i32, i32
  }
  func.func @transform_5(%arg0: i32) -> (i32, i32) {
    %c0_i32 = arith.constant 0 : i32
    %c0_i32_0 = arith.constant 0 : i32
    %c0_i32_1 = arith.constant 0 : i32
    return %c0_i32, %c0_i32_0 : i32, i32
  }
  func.func @transform_6(%arg0: i32) -> (i32, i32) {
    %c0_i32 = arith.constant 0 : i32
    %c0_i32_0 = arith.constant 0 : i32
    %c0_i32_1 = arith.constant 0 : i32
    return %c0_i32, %c0_i32_0 : i32, i32
  }
  func.func @transform_7(%arg0: i32) -> (i32, i32) {
    %c0_i32 = arith.constant 0 : i32
    %c0_i32_0 = arith.constant 0 : i32
    %c0_i32_1 = arith.constant 0 : i32
    return %c0_i32, %c0_i32_0 : i32, i32
  }
  func.func @transform_8(%arg0: i32) -> (i32, i32) {
    %c0_i32 = arith.constant 0 : i32
    %c0_i32_0 = arith.constant 0 : i32
    %c0_i32_1 = arith.constant 0 : i32
    return %c0_i32, %c0_i32_0 : i32, i32
  }
  func.func @transform_9(%arg0: i32) -> (i32, i32, i32) {
    %c0_i32 = arith.constant 0 : i32
    %c0_i32_0 = arith.constant 0 : i32
    %c0_i32_1 = arith.constant 0 : i32
    return %arg0, %c0_i32, %c0_i32_0 : i32, i32, i32
  }
}

</mosaic_0001>

<bundles_post_ra>
// kernel: tpu_custom_call.1
= control target key start
LH: loop header
LB: loop body
LE: loop exit
PB: predicated region body
PF: predicated region fallthrough
CT: control target
= control target key end

     0   :  { %s1234_s0 = inlined_call_operand.hbm [shape: f32[8,16,201], index: 0, kind: input, shape index: {}]   ;;  %s1235_s1 = inlined_call_operand.hbm [shape: f32[201,256], index: 1, kind: input, shape index: {}]   ;;  %s1236_s2 = inlined_call_operand.hbm [shape: f32[128,256], index: 2, kind: input, shape index: {}]   ;;  %s1237_s3 = inlined_call_operand.hbm [shape: f32[128,256], index: 3, kind: input, shape index: {}]   ;;  %s1238_s4 = inlined_call_operand.vmem [shape: f32[3,128], index: 4, kind: input, shape index: {}]   ;;  %s1239_s5 = inlined_call_operand.vmem [shape: f32[10,128], index: 5, kind: input, shape index: {}]   ;;  %s1240_s6 = inlined_call_operand.vmem [shape: f32[10,1], index: 6, kind: input, shape index: {}]   ;;  %s1241_s7 = inlined_call_operand.vmem [shape: f32[10,1], index: 7, kind: input, shape index: {}]   ;;  %s1242_s8 = inlined_call_operand.<no memory space> [shape: f32[1,1], index: 8, kind: input, shape index: {}]   ;;  %s1243_s9 = inlined_call_operand.hbm [shape: f32[1,1,16], index: 9, kind: output, shape index: {}]  }
   0x1   :  { %v14_v0 = vstv %s1242_s8 }
   0x2   :  { %15 = vst [vmem:[#allocation2] sm:$0x1] %v14_v0 }
   0x3   :  { %16 = vsyncpa [#allocation4], 0 }
   0x4   :  { %17 = vsyncpa [#allocation7], 0 }
   0x5   :  { %18 = vsyncpa [#allocation10], 0 }
   0x6   :  { %19 = vsyncpa [#allocation5], 0  ;;  %s37_s13 = sshll.u32 %s1235_s1, 4  ;;  %s1080_s14 = smov [#allocation6]   ;;  %s38_s13 = int_to_ptr.hbm [resolvable:$true] %s37_s13 }
   0x7   :  { %s39_s15 = sshll.u32 %s1080_s14, 4  ;;  %s24_s18 = sshll.u32 %s1234_s0, 4  ;;  %s40_s15 = int_to_ptr.vmem [resolvable:$true] %s39_s15  ;;  %s25_s18 = int_to_ptr.hbm [resolvable:$true] %s24_s18 }
   0x8   :  { %s1081_s19 = smov 256   ;;  %s1082_s20 = smov 16  }
   0x9   :  { %45 = dma.hbm_to_vmem [thread:$0]  %s38_s13, 6656, %s40_s15, [#allocation7], %s1081_s19, %s1081_s19, %s1082_s20  }
   0xa   :  { %s1083_s8 = smov [#allocation3]   ;;  %s50_s24 = sshll.u32 %s1236_s2, 4  ;;  %s51_s24 = int_to_ptr.hbm [resolvable:$true] %s50_s24 }
   0xb   :  { %s26_s21 = sshll.u32 %s1083_s8, 4  ;;  %s63_s26 = sshll.u32 %s1237_s3, 4  ;;  %s27_s21 = int_to_ptr.vmem [resolvable:$true] %s26_s21  ;;  %s64_s26 = int_to_ptr.hbm [resolvable:$true] %s63_s26 }
   0xc   :  { %32 = dma.hbm_to_vmem [thread:$0]  %s25_s18, 4096, %s27_s21, [#allocation4], %s1081_s19, %s1081_s19, %s1082_s20  }
   0xd   :  { %s1084_s27 = smov [#allocation8]   ;;  %s1085_s0 = smov [#allocation9]  }
   0xe   :  { %s52_s28 = sshll.u32 %s1084_s27, 4  ;;  %s65_s29 = sshll.u32 %s1085_s0, 4  ;;  %s53_s28 = int_to_ptr.vmem [resolvable:$true] %s52_s28  ;;  %s66_s29 = int_to_ptr.vmem [resolvable:$true] %s65_s29 }
   0xf   :  { %58 = dma.hbm_to_vmem [thread:$0]  %s51_s24, 4096, %s53_s28, [#allocation7], %s1081_s19, %s1081_s19, %s1082_s20  }
  0x10   :  { %71 = dma.hbm_to_vmem [thread:$0]  %s64_s26, 4096, %s66_s29, [#allocation10], %s1081_s19, %s1081_s19, %s1082_s20  }
  0x11   :  { %1072 = dma.done.wait [#allocation4], 4096  }
  0x12   :  { %1073 = vsyncadd [#allocation4], 4294963200 }
  0x13   :  { %1074 = dma.done.wait [#allocation7], 10752  }
  0x14   :  { %1075 = vsyncadd [#allocation7], 4294956544 }
  0x15   :  { %1076 = dma.done.wait [#allocation10], 4096  }
  0x16   :  { %1077 = vsyncadd [#allocation10], 4294963200  ;;  %v162_v1 = vld [vmem:[#allocation6 + $0xf8] sm:$0xff]  ;;  %v160_v2 = vld [vmem:[#allocation6 + $0xe8] sm:$0xff]  ;;  %vm232_vm0 = vcmask 1040384   ;;  %vm183_vm1 = vcmask 596992  }
  0x17   :  { %365 = vmatpush.msra.mxu2 %v162_v1  ;;  %v158_v3 = vld [vmem:[#allocation6 + $0xd8] sm:$0xff]  ;;  %v180_v5 = vld [vmem:[#allocation6 + $0x188] sm:$0xff]  ;;  %v161_v8 = vld [vmem:[#allocation6 + $0xf0] sm:$0xff]  ;;  %vm843_vm2 = vcmask 130048   ;;  %vm845_vm3 = vcmask 123904   ;;  %s891_s8 = sshll.u32 %s1243_s9, 4  ;;  %s892_s8 = int_to_ptr.hbm [resolvable:$true] %s891_s8 }
  0x18   :  { %v182_v4 = vld [vmem:[#allocation6 + $0x198] sm:$0x1]  ;;  %v156_v6 = vld [vmem:[#allocation6 + $0xc8] sm:$0xff]  ;;  %239 = vmatpush.msra.mxu0 %v161_v8  ;;  %v159_v11 = vld [vmem:[#allocation6 + $0xe0] sm:$0xff]  ;;  %vm882_vm7 = vcmask 122880  }
  0x19   :  { %366 = vmatpush.msra.mxu2 %v160_v2  ;;  %920 = vmatpush.msk.msra.mxu3 %vm232_vm0, %v182_v4  ;;  %v178_v7 = vld [vmem:[#allocation6 + $0x178] sm:$0xff]  ;;  %v176_v10 = vld [vmem:[#allocation6 + $0x168] sm:$0xff]  ;;  %v157_v12 = vld [vmem:[#allocation6 + $0xd0] sm:$0xff] }
  0x1a   :  { %v154_v9 = vld [vmem:[#allocation6 + $0xb8] sm:$0xff]  ;;  %v152_v13 = vld [vmem:[#allocation6 + $0xa8] sm:$0xff]  ;;  %240 = vmatpush.msra.mxu0 %v159_v11  ;;  %v155_v15 = vld [vmem:[#allocation6 + $0xc0] sm:$0xff] }
  0x1b   :  { %367 = vmatpush.msra.mxu2 %v158_v3  ;;  %437 = vmatpush.msra.mxu3 %v180_v5  ;;  %v174_v14 = vld [vmem:[#allocation6 + $0x158] sm:$0xff]  ;;  %v172_v17 = vld [vmem:[#allocation6 + $0x148] sm:$0xff]  ;;  %v153_v18 = vld [vmem:[#allocation6 + $0xb0] sm:$0xff] }
  0x1c   :  { %v150_v16 = vld [vmem:[#allocation6 + $0x98] sm:$0xff]  ;;  %241 = vmatpush.msra.mxu0 %v157_v12  ;;  %v181_v19 = vld [vmem:[#allocation6 + $0x190] sm:$0x1]  ;;  %v148_v20 = vld [vmem:[#allocation6 + $0x88] sm:$0xff] }
  0x1d   :  { %368 = vmatpush.msra.mxu2 %v156_v6  ;;  %438 = vmatpush.msra.mxu3 %v178_v7  ;;  %v170_v21 = vld [vmem:[#allocation6 + $0x138] sm:$0xff]  ;;  %v179_v22 = vld [vmem:[#allocation6 + $0x180] sm:$0xff]  ;;  %v177_v24 = vld [vmem:[#allocation6 + $0x170] sm:$0xff] }
  0x1e   :  { %242 = vmatpush.msra.mxu0 %v155_v15  ;;  %903 = vmatpush.msk.msra.mxu1 %vm232_vm0, %v181_v19  ;;  %v151_v23 = vld [vmem:[#allocation6 + $0xa0] sm:$0xff]  ;;  %v146_v25 = vld [vmem:[#allocation6 + $0x78] sm:$0xff]  ;;  %v168_v26 = vld [vmem:[#allocation6 + $0x128] sm:$0xff] }
  0x1f   :  { %369 = vmatpush.msra.mxu2 %v154_v9  ;;  %439 = vmatpush.msra.mxu3 %v176_v10  ;;  %v149_v27 = vld [vmem:[#allocation6 + $0x90] sm:$0xff]  ;;  %v175_v28 = vld [vmem:[#allocation6 + $0x160] sm:$0xff]  ;;  %v144_v29 = vld [vmem:[#allocation6 + $0x68] sm:$0xff] }
  0x20   :  { %243 = vmatpush.msra.mxu0 %v153_v18  ;;  %309 = vmatpush.msra.mxu1 %v179_v22  ;;  %v166_v30 = vld [vmem:[#allocation6 + $0x118] sm:$0xff]  ;;  %v147_v31 = vld [vmem:[#allocation6 + $0x80] sm:$0xff]  ;;  %v173_v32 = vld [vmem:[#allocation6 + $0x150] sm:$0xff] }
  0x21   :  { %370 = vmatpush.msra.mxu2 %v152_v13  ;;  %440 = vmatpush.msra.mxu3 %v174_v14  ;;  %v142_v33 = vld [vmem:[#allocation6 + $0x58] sm:$0xff]  ;;  %v164_v34 = vld [vmem:[#allocation6 + $0x108] sm:$0xff]  ;;  %v145_v36 = vld [vmem:[#allocation6 + $0x70] sm:$0xff] }
  0x22   :  { %244 = vmatpush.msra.mxu0 %v151_v23  ;;  %310 = vmatpush.msra.mxu1 %v177_v24  ;;  %v100_v35 = vld [vmem:[#allocation3 + $0x8] sm:$0xff]  ;;  %v171_v38 = vld [vmem:[#allocation6 + $0x140] sm:$0xff]  ;;  %v138_v40 = vld [vmem:[#allocation6 + $0x38] sm:$0xff] }
  0x23   :  { %371 = vmatpush.msra.mxu2 %v150_v16  ;;  %441 = vmatpush.msra.mxu3 %v172_v17  ;;  %v140_v37 = vld [vmem:[#allocation6 + $0x48] sm:$0xff]  ;;  %v143_v39 = vld [vmem:[#allocation6 + $0x60] sm:$0xff]  ;;  %v169_v41 = vld [vmem:[#allocation6 + $0x130] sm:$0xff] }
  0x24   :  { %245 = vmatpush.msra.mxu0 %v149_v27  ;;  %311 = vmatpush.msra.mxu1 %v175_v28  ;;  %v141_v42 = vld [vmem:[#allocation6 + $0x50] sm:$0xff]  ;;  %v136_v43 = vld [vmem:[#allocation6 + $0x28] sm:$0xff]  ;;  %v167_v44 = vld [vmem:[#allocation6 + $0x120] sm:$0xff] }
  0x25   :  { %372 = vmatpush.msra.mxu2 %v148_v20  ;;  %442 = vmatpush.msra.mxu3 %v170_v21  ;;  %v139_v45 = vld [vmem:[#allocation6 + $0x40] sm:$0xff]  ;;  %v134_v46 = vld [vmem:[#allocation6 + $0x18] sm:$0xff]  ;;  %v165_v47 = vld [vmem:[#allocation6 + $0x110] sm:$0xff] }
  0x26   :  { %246 = vmatpush.msra.mxu0 %v147_v31  ;;  %312 = vmatpush.msra.mxu1 %v173_v32  ;;  %v102_v48 = vld [vmem:[#allocation3 + $0x18] sm:$0xff]  ;;  %v137_v49 = vld [vmem:[#allocation6 + $0x30] sm:$0xff]  ;;  %v132_v50 = vld [vmem:[#allocation6 + $0x8] sm:$0xff] }
  0x27   :  { %373 = vmatpush.msra.mxu2 %v146_v25  ;;  %443 = vmatpush.msra.mxu3 %v168_v26  ;;  %v163_v51 = vld [vmem:[#allocation6 + $0x100] sm:$0xff]  ;;  %v133_v54 = vld [vmem:[#allocation6 + $0x10] sm:$0xff]  ;;  %v104_v56 = vld [vmem:[#allocation3 + $0x28] sm:$0xff] }
  0x28   :  { %247 = vmatpush.msra.mxu0 %v145_v36  ;;  %313 = vmatpush.msra.mxu1 %v171_v38  ;;  %v99_v52 = vld [vmem:[#allocation3] sm:$0xff]  ;;  %v101_v57 = vld [vmem:[#allocation3 + $0x10] sm:$0xff]  ;;  %v106_v58 = vld [vmem:[#allocation3 + $0x38] sm:$0xff] }
  0x29   :  { %374 = vmatpush.msra.mxu2 %v144_v29  ;;  %444 = vmatpush.msra.mxu3 %v166_v30  ;;  %v135_v53 = vld [vmem:[#allocation6 + $0x20] sm:$0xff]  ;;  %v108_v60 = vld [vmem:[#allocation3 + $0x48] sm:$0xff]  ;;  %v105_v61 = vld [vmem:[#allocation3 + $0x30] sm:$0xff] }
  0x2a   :  { %248 = vmatpush.msra.mxu0 %v143_v39  ;;  %314 = vmatpush.msra.mxu1 %v169_v41  ;;  %v131_v55 = vld [vmem:[#allocation6] sm:$0xff]  ;;  %v110_v62 = vld [vmem:[#allocation3 + $0x58] sm:$0xff]  ;;  %v112_v0 = vld [vmem:[#allocation3 + $0x68] sm:$0xff] }
  0x2b   :  { %375 = vmatpush.msra.mxu2 %v142_v33  ;;  %445 = vmatpush.msra.mxu3 %v164_v34  ;;  %v103_v59 = vld [vmem:[#allocation3 + $0x20] sm:$0xff]  ;;  %v109_v1 = vld [vmem:[#allocation3 + $0x50] sm:$0xff]  ;;  %v114_v2 = vld [vmem:[#allocation3 + $0x78] sm:$0xff] }
  0x2c   :  { %921 = vmatmul.msk.f32.vlgmr.msra.gmra.mxu3 %vm183_vm1, %v100_v35  ;;  %249 = vmatpush.msra.mxu0 %v141_v42  ;;  %v107_v63 = vld [vmem:[#allocation3 + $0x40] sm:$0xff]  ;;  %v116_v4 = vld [vmem:[#allocation3 + $0x88] sm:$0xff]  ;;  %v113_v5 = vld [vmem:[#allocation3 + $0x70] sm:$0xff] }
  0x2d   :  { %376 = vmatpush.msra.mxu2 %v140_v37  ;;  %315 = vmatpush.msra.mxu1 %v167_v44  ;;  %v111_v3 = vld [vmem:[#allocation3 + $0x60] sm:$0xff]  ;;  %v118_v6 = vld [vmem:[#allocation3 + $0x98] sm:$0xff]  ;;  %v120_v9 = vld [vmem:[#allocation3 + $0xa8] sm:$0xff] }
  0x2e   :  { %250 = vmatpush.msra.mxu0 %v139_v45  ;;  %v115_v7 = vld [vmem:[#allocation3 + $0x80] sm:$0xff]  ;;  %v581_v8 = vld [vmem:[#allocation8 + $0xf8] sm:$0xff]  ;;  %v117_v10 = vld [vmem:[#allocation3 + $0x90] sm:$0xff] }
  0x2f   :  { %377 = vmatpush.msra.mxu2 %v138_v40  ;;  %316 = vmatpush.msra.mxu1 %v165_v47  ;;  %v579_v11 = vld [vmem:[#allocation8 + $0xe8] sm:$0xff]  ;;  %v122_v12 = vld [vmem:[#allocation3 + $0xb8] sm:$0xff]  ;;  %v119_v13 = vld [vmem:[#allocation3 + $0xa0] sm:$0xff] }
  0x30   :  { %251 = vmatpush.msra.mxu0 %v137_v49  ;;  %621 = vmatpush.msrb.mxu3 %v581_v8  ;;  %v577_v14 = vld [vmem:[#allocation8 + $0xd8] sm:$0xff]  ;;  %v124_v15 = vld [vmem:[#allocation3 + $0xc8] sm:$0xff]  ;;  %v121_v16 = vld [vmem:[#allocation3 + $0xb0] sm:$0xff] }
  0x31   :  { %378 = vmatpush.msra.mxu2 %v136_v43  ;;  %317 = vmatpush.msra.mxu1 %v163_v51  ;;  %v580_v17 = vld [vmem:[#allocation8 + $0xf0] sm:$0xff]  ;;  %v575_v18 = vld [vmem:[#allocation8 + $0xc8] sm:$0xff]  ;;  %v578_v19 = vld [vmem:[#allocation8 + $0xe0] sm:$0xff] }
  0x32   :  { %252 = vmatpush.msra.mxu0 %v135_v53  ;;  %904 = vmatmul.msk.f32.vlgmr.msra.gmra.mxu1 %vm183_vm1, %v100_v35  ;;  %v126_v20 = vld [vmem:[#allocation3 + $0xd8] sm:$0xff]  ;;  %v123_v21 = vld [vmem:[#allocation3 + $0xc0] sm:$0xff]  ;;  %v576_v22 = vld [vmem:[#allocation8 + $0xd0] sm:$0xff] }
  0x33   :  { %379 = vmatpush.msra.mxu2 %v134_v46  ;;  %622 = vmatpush.msrb.mxu3 %v579_v11  ;;  %v128_v23 = vld [vmem:[#allocation3 + $0xe8] sm:$0xff]  ;;  %v574_v24 = vld [vmem:[#allocation8 + $0xc0] sm:$0xff]  ;;  %v125_v25 = vld [vmem:[#allocation3 + $0xd0] sm:$0xff] }
  0x34   :  { %922 = vmatmul.msk.f32.gmra.mxu3 %vm183_vm1, %v102_v48  ;;  %253 = vmatpush.msra.mxu0 %v133_v54  ;;  %v572_v26 = vld [vmem:[#allocation8 + $0xb0] sm:$0xff]  ;;  %v573_v27 = vld [vmem:[#allocation8 + $0xb8] sm:$0xff]  ;;  %v570_v28 = vld [vmem:[#allocation8 + $0xa0] sm:$0xff] }
  0x35   :  { %380 = vmatpush.msra.mxu2 %v132_v50  ;;  %623 = vmatpush.msrb.mxu3 %v577_v14  ;;  %v571_v29 = vld [vmem:[#allocation8 + $0xa8] sm:$0xff]  ;;  %v568_v30 = vld [vmem:[#allocation8 + $0x90] sm:$0xff]  ;;  %v569_v31 = vld [vmem:[#allocation8 + $0x98] sm:$0xff] }
  0x36   :  { %381 = vmatmul.f32.vlgmr.msra.gmra.mxu2 %v99_v52  ;;  %254 = vmatpush.msra.mxu0 %v131_v55  ;;  %v130_v32 = vld [vmem:[#allocation3 + $0xf8] sm:$0xff]  ;;  %v566_v33 = vld [vmem:[#allocation8 + $0x80] sm:$0xff]  ;;  %v567_v34 = vld [vmem:[#allocation8 + $0x88] sm:$0xff] }
  0x37   :  { %255 = vmatmul.f32.vlgmr.msra.gmra.mxu0 %v99_v52  ;;  %624 = vmatpush.msrb.mxu3 %v575_v18  ;;  %v127_v35 = vld [vmem:[#allocation3 + $0xe0] sm:$0xff]  ;;  %v564_v36 = vld [vmem:[#allocation8 + $0x70] sm:$0xff]  ;;  %v565_v37 = vld [vmem:[#allocation8 + $0x78] sm:$0xff] }
  0x38   :  { %582 = vmatpush.msrb.mxu1 %v580_v17  ;;  %v562_v38 = vld [vmem:[#allocation8 + $0x60] sm:$0xff]  ;;  %v563_v39 = vld [vmem:[#allocation8 + $0x68] sm:$0xff]  ;;  %v560_v40 = vld [vmem:[#allocation8 + $0x50] sm:$0xff] }
  0x39   :  { %625 = vmatpush.msrb.mxu3 %v573_v27  ;;  %v561_v41 = vld [vmem:[#allocation8 + $0x58] sm:$0xff]  ;;  %v558_v42 = vld [vmem:[#allocation8 + $0x40] sm:$0xff]  ;;  %v559_v43 = vld [vmem:[#allocation8 + $0x48] sm:$0xff] }
  0x3a   :  { %905 = vmatmul.msk.f32.gmra.mxu1 %vm183_vm1, %v102_v48  ;;  %v129_v44 = vld [vmem:[#allocation3 + $0xf0] sm:$0xff]  ;;  %v557_v46 = vld [vmem:[#allocation8 + $0x38] sm:$0xff]  ;;  %v554_v47 = vld [vmem:[#allocation8 + $0x20] sm:$0xff] }
  0x3b   :  { %583 = vmatpush.msrb.mxu1 %v578_v19  ;;  %626 = vmatpush.msrb.mxu3 %v571_v29  ;;  %v556_v45 = vld [vmem:[#allocation8 + $0x30] sm:$0xff]  ;;  %v555_v48 = vld [vmem:[#allocation8 + $0x28] sm:$0xff]  ;;  %v553_v51 = vld [vmem:[#allocation8 + $0x18] sm:$0xff] }
  0x3c   :  { %923 = vmatmul.msk.f32.gmra.mxu3 %vm183_vm1, %v104_v56  ;;  %v552_v50 = vld [vmem:[#allocation8 + $0x10] sm:$0xff]  ;;  %v550_v52 = vld [vmem:[#allocation8] sm:$0xff]  ;;  %v551_v53 = vld [vmem:[#allocation8 + $0x8] sm:$0xff] }
  0x3d   :  { %584 = vmatpush.msrb.mxu1 %v576_v22  ;;  %627 = vmatpush.msrb.mxu3 %v569_v31 }
  0x3e   :  { %384 = vmatmul.f32.gmra.mxu2 %v101_v57 }
  0x3f   :  { %258 = vmatmul.f32.gmra.mxu0 %v101_v57  ;;  %585 = vmatpush.msrb.mxu1 %v574_v24 }
  0x40   :  { %628 = vmatpush.msrb.mxu3 %v567_v34 }
  0x41   :  { %586 = vmatpush.msrb.mxu1 %v572_v26 }
  0x42   :  { %906 = vmatmul.msk.f32.gmra.mxu1 %vm183_vm1, %v104_v56  ;;  %629 = vmatpush.msrb.mxu3 %v565_v37 }
  0x43   :  { %587 = vmatpush.msrb.mxu1 %v570_v28 }
  0x44   :  { %924 = vmatmul.msk.f32.gmra.mxu3 %vm183_vm1, %v106_v58 }
  0x45   :  { %588 = vmatpush.msrb.mxu1 %v568_v30  ;;  %630 = vmatpush.msrb.mxu3 %v563_v39 }
  0x46   :  { %387 = vmatmul.f32.gmra.mxu2 %v103_v59 }
  0x47   :  { %261 = vmatmul.f32.gmra.mxu0 %v103_v59  ;;  %589 = vmatpush.msrb.mxu1 %v566_v33 }
  0x48   :  { %631 = vmatpush.msrb.mxu3 %v561_v41 }
  0x49   :  { %590 = vmatpush.msrb.mxu1 %v564_v36 }
  0x4a   :  { %907 = vmatmul.msk.f32.gmra.mxu1 %vm183_vm1, %v106_v58  ;;  %632 = vmatpush.msrb.mxu3 %v559_v43 }
  0x4b   :  { %591 = vmatpush.msrb.mxu1 %v562_v38 }
  0x4c   :  { %925 = vmatmul.msk.f32.gmra.mxu3 %vm183_vm1, %v108_v60 }
  0x4d   :  { %592 = vmatpush.msrb.mxu1 %v560_v40  ;;  %633 = vmatpush.msrb.mxu3 %v557_v46 }
  0x4e   :  { %390 = vmatmul.f32.gmra.mxu2 %v105_v61 }
  0x4f   :  { %264 = vmatmul.f32.gmra.mxu0 %v105_v61  ;;  %593 = vmatpush.msrb.mxu1 %v558_v42 }
  0x50   :  { %634 = vmatpush.msrb.mxu3 %v555_v48 }
  0x51   :  { %594 = vmatpush.msrb.mxu1 %v556_v45 }
  0x52   :  { %908 = vmatmul.msk.f32.gmra.mxu1 %vm183_vm1, %v108_v60  ;;  %635 = vmatpush.msrb.mxu3 %v553_v51 }
  0x53   :  { %595 = vmatpush.msrb.mxu1 %v554_v47 }
  0x54   :  { %926 = vmatmul.msk.f32.gmra.mxu3 %vm183_vm1, %v110_v62 }
  0x55   :  { %596 = vmatpush.msrb.mxu1 %v552_v50  ;;  %636 = vmatpush.msrb.mxu3 %v551_v53 }
  0x56   :  { %393 = vmatmul.f32.gmra.mxu2 %v107_v63 }
  0x57   :  { %267 = vmatmul.f32.gmra.mxu0 %v107_v63  ;;  %597 = vmatpush.msrb.mxu1 %v550_v52  ;;  %v1190_v63 = vld [vmem:[%s1238_s4] sm:$0x7] }
  0x5a   :  { %909 = vmatmul.msk.f32.gmra.mxu1 %vm183_vm1, %v110_v62 }
  0x5c   :  { %927 = vmatmul.msk.f32.gmra.mxu3 %vm183_vm1, %v112_v0 }
  0x5e   :  { %396 = vmatmul.f32.gmra.mxu2 %v109_v1 }
  0x5f   :  { %270 = vmatmul.f32.gmra.mxu0 %v109_v1 }
  0x62   :  { %910 = vmatmul.msk.f32.gmra.mxu1 %vm183_vm1, %v112_v0 }
  0x64   :  { %928 = vmatmul.msk.f32.gmra.mxu3 %vm183_vm1, %v114_v2 }
  0x66   :  { %399 = vmatmul.f32.gmra.mxu2 %v111_v3 }
  0x67   :  { %273 = vmatmul.f32.gmra.mxu0 %v111_v3 }
  0x6a   :  { %911 = vmatmul.msk.f32.gmra.mxu1 %vm183_vm1, %v114_v2  ;;  %v1193_v2 = vperm.slane %v1190_v63, 0 }
  0x6c   :  { %929 = vmatmul.msk.f32.gmra.mxu3 %vm183_vm1, %v116_v4 }
  0x6e   :  { %402 = vmatmul.f32.gmra.mxu2 %v113_v5 }
  0x6f   :  { %276 = vmatmul.f32.gmra.mxu0 %v113_v5 }
  0x72   :  { %912 = vmatmul.msk.f32.gmra.mxu1 %vm183_vm1, %v116_v4 }
  0x74   :  { %930 = vmatmul.msk.f32.gmra.mxu3 %vm183_vm1, %v118_v6 }
  0x76   :  { %405 = vmatmul.f32.gmra.mxu2 %v115_v7 }
  0x77   :  { %279 = vmatmul.f32.gmra.mxu0 %v115_v7 }
  0x7a   :  { %913 = vmatmul.msk.f32.gmra.mxu1 %vm183_vm1, %v118_v6 }
  0x7c   :  { %931 = vmatmul.msk.f32.gmra.mxu3 %vm183_vm1, %v120_v9 }
  0x7e   :  { %408 = vmatmul.f32.gmra.mxu2 %v117_v10 }
  0x7f   :  { %282 = vmatmul.f32.gmra.mxu0 %v117_v10 }
  0x82   :  { %914 = vmatmul.msk.f32.gmra.mxu1 %vm183_vm1, %v120_v9 }
  0x84   :  { %932 = vmatmul.msk.f32.gmra.mxu3 %vm183_vm1, %v122_v12 }
  0x86   :  { %411 = vmatmul.f32.gmra.mxu2 %v119_v13 }
  0x87   :  { %285 = vmatmul.f32.gmra.mxu0 %v119_v13 }
  0x8a   :  { %915 = vmatmul.msk.f32.gmra.mxu1 %vm183_vm1, %v122_v12 }
  0x8c   :  { %933 = vmatmul.msk.f32.gmra.mxu3 %vm183_vm1, %v124_v15 }
  0x8e   :  { %414 = vmatmul.f32.gmra.mxu2 %v121_v16 }
  0x8f   :  { %288 = vmatmul.f32.gmra.mxu0 %v121_v16 }
  0x92   :  { %916 = vmatmul.msk.f32.gmra.mxu1 %vm183_vm1, %v124_v15 }
  0x94   :  { %934 = vmatmul.msk.f32.gmra.mxu3 %vm183_vm1, %v126_v20 }
  0x96   :  { %417 = vmatmul.f32.gmra.mxu2 %v123_v21 }
  0x97   :  { %291 = vmatmul.f32.gmra.mxu0 %v123_v21 }
  0x9a   :  { %917 = vmatmul.msk.f32.gmra.mxu1 %vm183_vm1, %v126_v20 }
  0x9c   :  { %935 = vmatmul.msk.f32.gmra.mxu3 %vm183_vm1, %v128_v23 }
  0x9e   :  { %420 = vmatmul.f32.gmra.mxu2 %v125_v25 }
  0x9f   :  { %294 = vmatmul.f32.gmra.mxu0 %v125_v25 }
  0xa2   :  { %918 = vmatmul.msk.f32.gmra.mxu1 %vm183_vm1, %v128_v23 }
  0xa4   :  { %936 = vmatmul.msk.f32.gmra.mxu3 %vm183_vm1, %v130_v32 }
  0xa6   :  { %423 = vmatmul.f32.gmra.mxu2 %v127_v35 }
  0xa7   :  { %297 = vmatmul.f32.gmra.mxu0 %v127_v35 }
  0xaa   :  { %919 = vmatmul.msk.f32.gmra.mxu1 %vm183_vm1, %v130_v32 }
  0xae   :  { %426 = vmatmul.f32.gmra.mxu2 %v129_v44 }
  0xaf   :  { %v447_v49 = vpop.f32.mrf.mxu3  ;;  %299 = vmatmul.f32.gmra.mxu0 %v129_v44  ;;  %v319_v54 = vpop.f32.mrf.mxu1 }
  0xb4   :  { %v256_v56 = vpop.f32.mrf.mxu0 }
  0xb5   :  { %v320_v3 = vadd.f32 %v319_v54, %v256_v56 }
  0xb7   :  { %v450_v55 = vpop.f32.mrf.mxu3  ;;  %v322_v58 = vpop.f32.mrf.mxu1 }
  0xb9   :  { %v382_v57 = vpop.f32.mrf.mxu2 }
  0xba   :  { %v448_v1 = vadd.f32 %v447_v49, %v382_v57 }
  0xbc   :  { %v259_v60 = vpop.f32.mrf.mxu0  ;;  %v510_v7 = vadd.f32 %v1193_v2, %v448_v1 }
  0xbd   :  { %v323_v15 = vadd.f32 %v322_v58, %v259_v60 }
  0xbe   :  { %v526_v12 = vmax.f32 %v510_v7, 0.0 }
  0xbf   :  { %v453_v59 = vpop.f32.mrf.mxu3  ;;  %v325_v62 = vpop.f32.mrf.mxu1 }
  0xc1   :  { %v385_v61 = vpop.f32.mrf.mxu2 }
  0xc2   :  { %v451_v13 = vadd.f32 %v450_v55, %v385_v61 }
  0xc4   :  { %v262_v4 = vpop.f32.mrf.mxu0  ;;  %v511_v20 = vadd.f32 %v1193_v2, %v451_v13 }
  0xc5   :  { %v326_v34 = vadd.f32 %v325_v62, %v262_v4 }
  0xc6   :  { %v527_v25 = vmax.f32 %v511_v20, 0.0 }
  0xc7   :  { %v456_v0 = vpop.f32.mrf.mxu3  ;;  %v328_v9 = vpop.f32.mrf.mxu1 }
  0xc9   :  { %v388_v5 = vpop.f32.mrf.mxu2 }
  0xca   :  { %v454_v6 = vadd.f32 %v453_v59, %v388_v5 }
  0xcc   :  { %v495_v8 = vadd.f32 %v454_v6, %v320_v3  ;;  %v265_v16 = vpop.f32.mrf.mxu0 }
  0xcd   :  { %v329_v43 = vadd.f32 %v328_v9, %v265_v16 }
  0xce   :  { %v512_v10 = vadd.f32 %v1193_v2, %v495_v8 }
  0xcf   :  { %v459_v11 = vpop.f32.mrf.mxu3  ;;  %v331_v22 = vpop.f32.mrf.mxu1 }
  0xd0   :  { %v528_v14 = vmax.f32 %v512_v10, 0.0 }
  0xd1   :  { %v391_v17 = vpop.f32.mrf.mxu2 }
  0xd2   :  { %v457_v18 = vadd.f32 %v456_v0, %v391_v17  ;;  %v542_v19 = vmax.f32 %v526_v12, %v528_v14 }
  0xd4   :  { %v496_v21 = vadd.f32 %v457_v18, %v323_v15  ;;  %598 = vmatmul.f32.vlgmr.msrb.gmra.mxu1 %v542_v19  ;;  %637 = vmatmul.f32.vlgmr.msrb.gmra.mxu3 %v542_v19  ;;  %v268_v27 = vpop.f32.mrf.mxu0 }
  0xd5   :  { %v332_v39 = vadd.f32 %v331_v22, %v268_v27 }
  0xd6   :  { %v513_v23 = vadd.f32 %v1193_v2, %v496_v21 }
  0xd7   :  { %v462_v24 = vpop.f32.mrf.mxu3  ;;  %v334_v30 = vpop.f32.mrf.mxu1 }
  0xd8   :  { %v529_v26 = vmax.f32 %v513_v23, 0.0 }
  0xd9   :  { %v394_v28 = vpop.f32.mrf.mxu2 }
  0xda   :  { %v543_v29 = vmax.f32 %v527_v25, %v529_v26  ;;  %v460_v35 = vadd.f32 %v459_v11, %v394_v28 }
  0xdc   :  { %601 = vmatmul.f32.gmra.mxu1 %v543_v29  ;;  %640 = vmatmul.f32.gmra.mxu3 %v543_v29  ;;  %v271_v32 = vpop.f32.mrf.mxu0  ;;  %v497_v38 = vadd.f32 %v460_v35, %v326_v34 }
  0xdd   :  { %v335_v51 = vadd.f32 %v334_v30, %v271_v32 }
  0xde   :  { %v514_v46 = vadd.f32 %v1193_v2, %v497_v38 }
  0xdf   :  { %v465_v31 = vpop.f32.mrf.mxu3  ;;  %v337_v36 = vpop.f32.mrf.mxu1 }
  0xe0   :  { %v530_v52 = vmax.f32 %v514_v46, 0.0 }
  0xe1   :  { %v397_v33 = vpop.f32.mrf.mxu2 }
  0xe2   :  { %v463_v44 = vadd.f32 %v462_v24, %v397_v33 }
  0xe4   :  { %v274_v40 = vpop.f32.mrf.mxu0  ;;  %v498_v50 = vadd.f32 %v463_v44, %v329_v43 }
  0xe5   :  { %v338_v10 = vadd.f32 %v337_v36, %v274_v40 }
  0xe6   :  { %v515_v59 = vadd.f32 %v1193_v2, %v498_v50 }
  0xe7   :  { %v468_v37 = vpop.f32.mrf.mxu3  ;;  %v340_v47 = vpop.f32.mrf.mxu1 }
  0xe8   :  { %v531_v0 = vmax.f32 %v515_v59, 0.0 }
  0xe9   :  { %v400_v41 = vpop.f32.mrf.mxu2 }
  0xea   :  { %v466_v42 = vadd.f32 %v465_v31, %v400_v41 }
  0xec   :  { %v499_v45 = vadd.f32 %v466_v42, %v332_v39  ;;  %v277_v54 = vpop.f32.mrf.mxu0 }
  0xed   :  { %v341_v19 = vadd.f32 %v340_v47, %v277_v54 }
  0xee   :  { %v516_v48 = vadd.f32 %v1193_v2, %v499_v45  ;;  %v720_v45 = vld [vmem:[#allocation9 + $0xf8] sm:$0xff] }
  0xef   :  { %v471_v49 = vpop.f32.mrf.mxu3  ;;  %v343_v60 = vpop.f32.mrf.mxu1  ;;  %748 = vmatpush.msrb.mxu2 %v720_v45  ;;  %v690_v45 = vld [vmem:[#allocation9 + $0x8] sm:$0xff] }
  0xf0   :  { %v532_v53 = vmax.f32 %v516_v48, 0.0 }
  0xf1   :  { %v403_v55 = vpop.f32.mrf.mxu2 }
  0xf2   :  { %v469_v56 = vadd.f32 %v468_v37, %v403_v55  ;;  %v544_v57 = vmax.f32 %v530_v52, %v532_v53 }
  0xf4   :  { %v500_v58 = vadd.f32 %v469_v56, %v335_v51  ;;  %604 = vmatmul.f32.gmra.mxu1 %v544_v57  ;;  %643 = vmatmul.f32.gmra.mxu3 %v544_v57  ;;  %v280_v3 = vpop.f32.mrf.mxu0 }
  0xf5   :  { %v344_v15 = vadd.f32 %v343_v60, %v280_v3 }
  0xf6   :  { %v517_v61 = vadd.f32 %v1193_v2, %v500_v58 }
  0xf7   :  { %v474_v62 = vpop.f32.mrf.mxu3  ;;  %v346_v6 = vpop.f32.mrf.mxu1 }
  0xf8   :  { %v533_v1 = vmax.f32 %v517_v61, 0.0 }
  0xf9   :  { %v406_v4 = vpop.f32.mrf.mxu2 }
  0xfa   :  { %v545_v5 = vmax.f32 %v531_v0, %v533_v1  ;;  %v472_v11 = vadd.f32 %v471_v49, %v406_v4 }
  0xfc   :  { %607 = vmatmul.f32.gmra.mxu1 %v545_v5  ;;  %646 = vmatmul.f32.gmra.mxu3 %v545_v5  ;;  %v283_v8 = vpop.f32.mrf.mxu0  ;;  %v501_v14 = vadd.f32 %v472_v11, %v338_v10 }
  0xfd   :  { %v347_v26 = vadd.f32 %v346_v6, %v283_v8  ;;  %v718_v8 = vld [vmem:[#allocation9 + $0xe8] sm:$0xff] }
  0xfe   :  { %v518_v22 = vadd.f32 %v1193_v2, %v501_v14  ;;  %749 = vmatpush.msrb.mxu2 %v718_v8 }
  0xff   :  { %v477_v7 = vpop.f32.mrf.mxu3  ;;  %v349_v12 = vpop.f32.mrf.mxu1 }
 0x100   :  { %v534_v27 = vmax.f32 %v518_v22, 0.0  ;;  %v712_v22 = vld [vmem:[#allocation9 + $0xb8] sm:$0xff] }
 0x101   :  { %v409_v9 = vpop.f32.mrf.mxu2 }
 0x102   :  { %v475_v20 = vadd.f32 %v474_v62, %v409_v9 }
 0x104   :  { %v286_v16 = vpop.f32.mrf.mxu0  ;;  %v502_v25 = vadd.f32 %v475_v20, %v341_v19  ;;  %v714_v19 = vld [vmem:[#allocation9 + $0xc8] sm:$0xff]  ;;  %v717_v20 = vld [vmem:[#allocation9 + $0xe0] sm:$0xff] }
 0x105   :  { %v350_v48 = vadd.f32 %v349_v12, %v286_v16 }
 0x106   :  { %v519_v35 = vadd.f32 %v1193_v2, %v502_v25  ;;  %v708_v25 = vld [vmem:[#allocation9 + $0x98] sm:$0xff] }
 0x107   :  { %v480_v13 = vpop.f32.mrf.mxu3  ;;  %v352_v23 = vpop.f32.mrf.mxu1 }
 0x108   :  { %v535_v38 = vmax.f32 %v519_v35, 0.0  ;;  %v700_v35 = vld [vmem:[#allocation9 + $0x58] sm:$0xff] }
 0x109   :  { %v412_v17 = vpop.f32.mrf.mxu2 }
 0x10a   :  { %v478_v18 = vadd.f32 %v477_v7, %v412_v17  ;;  %v716_v17 = vld [vmem:[#allocation9 + $0xd8] sm:$0xff] }
 0x10b   :  { %750 = vmatpush.msrb.mxu2 %v716_v17 }
 0x10c   :  { %v503_v21 = vadd.f32 %v478_v18, %v344_v15  ;;  %v289_v29 = vpop.f32.mrf.mxu0  ;;  %v719_v18 = vld [vmem:[#allocation9 + $0xf0] sm:$0xff] }
 0x10d   :  { %v353_v57 = vadd.f32 %v352_v23, %v289_v29  ;;  %721 = vmatpush.msrb.mxu0 %v719_v18  ;;  %751 = vmatpush.msrb.mxu2 %v714_v19  ;;  %v713_v23 = vld [vmem:[#allocation9 + $0xc0] sm:$0xff] }
 0x10e   :  { %v520_v24 = vadd.f32 %v1193_v2, %v503_v21  ;;  %v715_v21 = vld [vmem:[#allocation9 + $0xd0] sm:$0xff]  ;;  %v705_v29 = vld [vmem:[#allocation9 + $0x80] sm:$0xff] }
 0x10f   :  { %v483_v31 = vpop.f32.mrf.mxu3  ;;  %v355_v36 = vpop.f32.mrf.mxu1  ;;  %722 = vmatpush.msrb.mxu0 %v717_v20  ;;  %752 = vmatpush.msrb.mxu2 %v712_v22 }
 0x110   :  { %v536_v28 = vmax.f32 %v520_v24, 0.0  ;;  %v710_v24 = vld [vmem:[#allocation9 + $0xa8] sm:$0xff] }
 0x111   :  { %v415_v30 = vpop.f32.mrf.mxu2  ;;  %723 = vmatpush.msrb.mxu0 %v715_v21  ;;  %753 = vmatpush.msrb.mxu2 %v710_v24 }
 0x112   :  { %v481_v32 = vadd.f32 %v480_v13, %v415_v30  ;;  %v546_v33 = vmax.f32 %v534_v27, %v536_v28  ;;  %v706_v27 = vld [vmem:[#allocation9 + $0x88] sm:$0xff]  ;;  %v707_v28 = vld [vmem:[#allocation9 + $0x90] sm:$0xff] }
 0x113   :  { %724 = vmatpush.msrb.mxu0 %v713_v23  ;;  %754 = vmatpush.msrb.mxu2 %v708_v25  ;;  %v703_v30 = vld [vmem:[#allocation9 + $0x70] sm:$0xff] }
 0x114   :  { %v504_v34 = vadd.f32 %v481_v32, %v347_v26  ;;  %610 = vmatmul.f32.gmra.mxu1 %v546_v33  ;;  %649 = vmatmul.f32.gmra.mxu3 %v546_v33  ;;  %v292_v40 = vpop.f32.mrf.mxu0  ;;  %v709_v26 = vld [vmem:[#allocation9 + $0xa0] sm:$0xff]  ;;  %v702_v33 = vld [vmem:[#allocation9 + $0x68] sm:$0xff] }
 0x115   :  { %v356_v53 = vadd.f32 %v355_v36, %v292_v40  ;;  %755 = vmatpush.msrb.mxu2 %v706_v27  ;;  %v701_v32 = vld [vmem:[#allocation9 + $0x60] sm:$0xff] }
 0x116   :  { %v521_v37 = vadd.f32 %v1193_v2, %v504_v34  ;;  %v699_v34 = vld [vmem:[#allocation9 + $0x50] sm:$0xff]  ;;  %v697_v36 = vld [vmem:[#allocation9 + $0x40] sm:$0xff] }
 0x117   :  { %v486_v43 = vpop.f32.mrf.mxu3  ;;  %v358_v44 = vpop.f32.mrf.mxu1  ;;  %v693_v40 = vld [vmem:[#allocation9 + $0x20] sm:$0xff] }
 0x118   :  { %v537_v39 = vmax.f32 %v521_v37, 0.0  ;;  %v698_v37 = vld [vmem:[#allocation9 + $0x48] sm:$0xff] }
 0x119   :  { %v418_v41 = vpop.f32.mrf.mxu2 }
 0x11a   :  { %v547_v42 = vmax.f32 %v535_v38, %v537_v39  ;;  %v484_v49 = vadd.f32 %v483_v31, %v418_v41  ;;  %v704_v31 = vld [vmem:[#allocation9 + $0x78] sm:$0xff]  ;;  %v695_v38 = vld [vmem:[#allocation9 + $0x30] sm:$0xff]  ;;  %v694_v41 = vld [vmem:[#allocation9 + $0x28] sm:$0xff] }
 0x11b   :  { %756 = vmatpush.msrb.mxu2 %v704_v31  ;;  %v696_v39 = vld [vmem:[#allocation9 + $0x38] sm:$0xff]  ;;  %v1086_v31 = vmov 0  }
 0x11c   :  { %613 = vmatmul.f32.gmra.mxu1 %v547_v42  ;;  %652 = vmatmul.f32.gmra.mxu3 %v547_v42  ;;  %v295_v46 = vpop.f32.mrf.mxu0  ;;  %v505_v52 = vadd.f32 %v484_v49, %v350_v48  ;;  %v691_v42 = vld [vmem:[#allocation9 + $0x10] sm:$0xff]  ;;  %v668_v48 = vperm.slane %v1190_v63, 1 }
 0x11d   :  { %v359_v3 = vadd.f32 %v358_v44, %v295_v46  ;;  %757 = vmatpush.msrb.mxu2 %v702_v33  ;;  %v689_v44 = vld [vmem:[#allocation9] sm:$0xff]  ;;  %945 = vset.pattern.permute.xlu0 %v1086_v31 }
 0x11e   :  { %v522_v60 = vadd.f32 %v1193_v2, %v505_v52  ;;  %946 = vset.pattern.permute.xlu1 %v1086_v31  ;;  %947 = vset.pattern.permute.xlu2 %v1086_v31  ;;  %v829_v33 = vld [vmem:[%s1241_s7] sm:$0xff] }
 0x11f   :  { %v361_v50 = vpop.f32.mrf.mxu1  ;;  %v489_v51 = vpop.f32.mrf.mxu3  ;;  %758 = vmatpush.msrb.mxu2 %v700_v35  ;;  %833 = vperm.xlu1 %946, %v829_v33   ;;  %v793_v35 = vld [vmem:[%s1240_s6 + $0x8] sm:$0x3] }
 0x120   :  { %v538_v4 = vmax.f32 %v522_v60, 0.0 }
 0x121   :  { %v421_v47 = vpop.f32.mrf.mxu2  ;;  %759 = vmatpush.msrb.mxu2 %v698_v37 }
 0x122   :  { %v487_v58 = vadd.f32 %v486_v43, %v421_v47  ;;  %v692_v43 = vld [vmem:[#allocation9 + $0x18] sm:$0xff] }
 0x123   :  { %760 = vmatpush.msrb.mxu2 %v696_v39  ;;  %v779_v39 = vperm.slane %v1190_v63, 2  ;;  %v790_v63 = vld [vmem:[%s1239_s5] sm:$0xff] }
 0x124   :  { %v298_v54 = vpop.f32.mrf.mxu0  ;;  %v506_v1 = vadd.f32 %v487_v58, %v353_v57 }
 0x125   :  { %761 = vmatpush.msrb.mxu2 %v694_v41 }
 0x126   :  { %v523_v12 = vadd.f32 %v1193_v2, %v506_v1 }
 0x127   :  { %v363_v61 = vpop.f32.mrf.mxu1  ;;  %v492_v0 = vpop.f32.mrf.mxu3  ;;  %762 = vmatpush.msrb.mxu2 %v692_v43 }
 0x128   :  { %v539_v14 = vmax.f32 %v523_v12, 0.0 }
 0x129   :  { %v424_v55 = vpop.f32.mrf.mxu2  ;;  %763 = vmatpush.msrb.mxu2 %v690_v45 }
 0x12a   :  { %v490_v56 = vadd.f32 %v489_v51, %v424_v55 }
 0x12c   :  { %v507_v59 = vadd.f32 %v490_v56, %v356_v53  ;;  %v300_v6 = vpop.f32.mrf.mxu0 }
 0x12e   :  { %v524_v62 = vadd.f32 %v1193_v2, %v507_v59 }
 0x130   :  { %v540_v5 = vmax.f32 %v524_v62, 0.0 }
 0x131   :  { %v427_v7 = vpop.f32.mrf.mxu2 }
 0x132   :  { %v493_v9 = vadd.f32 %v492_v0, %v427_v7  ;;  %v548_v10 = vmax.f32 %v538_v4, %v540_v5 }
 0x134   :  { %v508_v11 = vadd.f32 %v493_v9, %v359_v3  ;;  %616 = vmatmul.f32.gmra.mxu1 %v548_v10  ;;  %655 = vmatmul.f32.gmra.mxu3 %v548_v10 }
 0x136   :  { %v525_v13 = vadd.f32 %v1193_v2, %v508_v11  ;;  %v711_v2 = vld [vmem:[#allocation9 + $0xb0] sm:$0xff] }
 0x137   :  { %725 = vmatpush.msrb.mxu0 %v711_v2 }
 0x138   :  { %v541_v15 = vmax.f32 %v525_v13, 0.0 }
 0x139   :  { %726 = vmatpush.msrb.mxu0 %v709_v26 }
 0x13a   :  { %v549_v16 = vmax.f32 %v539_v14, %v541_v15 }
 0x13b   :  { %727 = vmatpush.msrb.mxu0 %v707_v28 }
 0x13c   :  { %618 = vmatmul.f32.gmra.mxu1 %v549_v16  ;;  %658 = vmatmul.f32.gmra.mxu3 %v549_v16 }
 0x13d   :  { %728 = vmatpush.msrb.mxu0 %v705_v29 }
 0x13f   :  { %729 = vmatpush.msrb.mxu0 %v703_v30 }
 0x141   :  { %730 = vmatpush.msrb.mxu0 %v701_v32  ;;  %v792_v32 = vld [vmem:[%s1240_s6] sm:$0xff] }
 0x142   :  { %796 = vperm.xlu0 %945, %v792_v32  }
 0x143   :  { %731 = vmatpush.msrb.mxu0 %v699_v34 }
 0x145   :  { %732 = vmatpush.msrb.mxu0 %v697_v36  ;;  %v854_v36 = vld [vmem:[#allocation2] sm:$0x1] }
 0x146   :  { %857 = vperm.xlu2 %947, %v854_v36  }
 0x147   :  { %733 = vmatpush.msrb.mxu0 %v695_v38  ;;  %v830_v38 = vld [vmem:[%s1241_s7 + $0x8] sm:$0x3] }
 0x148   :  { %838 = vperm.xlu1 %946, %v830_v38  }
 0x149   :  { %734 = vmatpush.msrb.mxu0 %v693_v40 }
 0x14a   :  { %801 = vperm.xlu0 %945, %v793_v35  }
 0x14b   :  { %735 = vmatpush.msrb.mxu0 %v691_v42 }
 0x14d   :  { %736 = vmatpush.msrb.mxu0 %v689_v44 }
 0x151   :  { %v599_v49 = vpop.f32.mrf.mxu1 }
 0x157   :  { %v638_v46 = vpop.f32.mrf.mxu3 }
 0x158   :  { %v669_v51 = vadd.f32 %v668_v48, %v638_v46 }
 0x159   :  { %v602_v57 = vpop.f32.mrf.mxu1 }
 0x15a   :  { %v677_v54 = vmax.f32 %v669_v51, 0.0 }
 0x15f   :  { %v641_v47 = vpop.f32.mrf.mxu3 }
 0x160   :  { %v670_v59 = vadd.f32 %v668_v48, %v641_v47 }
 0x162   :  { %v678_v62 = vmax.f32 %v670_v59, 0.0 }
 0x171   :  { %v605_v3 = vpop.f32.mrf.mxu1 }
 0x177   :  { %v644_v50 = vpop.f32.mrf.mxu3 }
 0x178   :  { %v662_v52 = vadd.f32 %v644_v50, %v599_v49 }
 0x179   :  { %v608_v4 = vpop.f32.mrf.mxu1 }
 0x17a   :  { %v671_v53 = vadd.f32 %v668_v48, %v662_v52 }
 0x17c   :  { %v679_v55 = vmax.f32 %v671_v53, 0.0  ;;  %v791_v53 = vld [vmem:[%s1239_s5 + $0x8] sm:$0x3]  ;;  %s1087_s5 = smov [#allocation11]  }
 0x17d   :  { %s889_s18 = sshll.u32 %s1087_s5, 4  ;;  %s890_s18 = int_to_ptr.vmem [resolvable:$true] %s889_s18 }
 0x17e   :  { %v685_v56 = vmax.f32 %v677_v54, %v679_v55 }
 0x17f   :  { %v647_v58 = vpop.f32.mrf.mxu3 }
 0x180   :  { %v663_v60 = vadd.f32 %v647_v58, %v602_v57  ;;  %737 = vmatmul.f32.vlgmr.msrb.gmra.mxu0 %v685_v56  ;;  %764 = vmatmul.f32.vlgmr.msrb.gmra.mxu2 %v685_v56 }
 0x182   :  { %v672_v61 = vadd.f32 %v668_v48, %v663_v60 }
 0x184   :  { %v680_v0 = vmax.f32 %v672_v61, 0.0 }
 0x186   :  { %v686_v1 = vmax.f32 %v678_v62, %v680_v0 }
 0x188   :  { %740 = vmatmul.f32.gmra.mxu0 %v686_v1  ;;  %767 = vmatmul.f32.gmra.mxu2 %v686_v1 }
 0x191   :  { %v611_v5 = vpop.f32.mrf.mxu1  ;;  %v834_v56 = vpop.permute.xlu1 %833 }
 0x197   :  { %v650_v6 = vpop.f32.mrf.mxu3 }
 0x198   :  { %v664_v10 = vadd.f32 %v650_v6, %v605_v3 }
 0x199   :  { %v614_v7 = vpop.f32.mrf.mxu1 }
 0x19a   :  { %v673_v12 = vadd.f32 %v668_v48, %v664_v10 }
 0x19c   :  { %v681_v16 = vmax.f32 %v673_v12, 0.0 }
 0x19f   :  { %v653_v8 = vpop.f32.mrf.mxu3 }
 0x1a0   :  { %v665_v17 = vadd.f32 %v653_v8, %v608_v4  ;;  %v858_v10 = vpop.permute.xlu2 %857 }
 0x1a2   :  { %v674_v21 = vadd.f32 %v668_v48, %v665_v17 }
 0x1a4   :  { %v682_v24 = vmax.f32 %v674_v21, 0.0 }
 0x1b1   :  { %v617_v9 = vpop.f32.mrf.mxu1 }
 0x1b4   :  { %v797_v54 = vpop.permute.xlu0 %796 }
 0x1b7   :  { %v656_v11 = vpop.f32.mrf.mxu3 }
 0x1b8   :  { %v666_v13 = vadd.f32 %v656_v11, %v611_v5 }
 0x1b9   :  { %v619_v14 = vpop.f32.mrf.mxu1 }
 0x1ba   :  { %v675_v15 = vadd.f32 %v668_v48, %v666_v13  ;;  %v839_v1 = vpop.permute.xlu1 %838  ;;  %v860_v13 = vperm.slane %v858_v10, 0 }
 0x1bc   :  { %v683_v18 = vmax.f32 %v675_v15, 0.0  ;;  %v802_v59 = vpop.permute.xlu0 %801 }
 0x1be   :  { %v687_v19 = vmax.f32 %v681_v16, %v683_v18 }
 0x1bf   :  { %v659_v20 = vpop.f32.mrf.mxu3 }
 0x1c0   :  { %v667_v22 = vadd.f32 %v659_v20, %v614_v7  ;;  %743 = vmatmul.f32.gmra.mxu0 %v687_v19  ;;  %770 = vmatmul.f32.gmra.mxu2 %v687_v19 }
 0x1c2   :  { %v676_v23 = vadd.f32 %v668_v48, %v667_v22 }
 0x1c4   :  { %v684_v2 = vmax.f32 %v676_v23, 0.0 }
 0x1c6   :  { %v688_v25 = vmax.f32 %v682_v24, %v684_v2 }
 0x1c8   :  { %745 = vmatmul.f32.gmra.mxu0 %v688_v25  ;;  %773 = vmatmul.f32.gmra.mxu2 %v688_v25 }
 0x1fd   :  { %v738_v26 = vpop.f32.mrf.mxu0 }
 0x203   :  { %v765_v27 = vpop.f32.mrf.mxu2 }
 0x204   :  { %v780_v46 = vadd.f32 %v779_v39, %v765_v27 }
 0x205   :  { %v741_v28 = vpop.f32.mrf.mxu0 }
 0x206   :  { %v784_v51 = vmax.f32 %v780_v46, 0.0 }
 0x20b   :  { %v768_v29 = vpop.f32.mrf.mxu2 }
 0x20c   :  { %v781_v42 = vadd.f32 %v779_v39, %v768_v29 }
 0x20e   :  { %v785_v47 = vmax.f32 %v781_v42, 0.0 }
 0x23d   :  { %v744_v30 = vpop.f32.mrf.mxu0 }
 0x243   :  { %v771_v34 = vpop.f32.mrf.mxu2 }
 0x244   :  { %v777_v40 = vadd.f32 %v771_v34, %v738_v26 }
 0x245   :  { %v746_v37 = vpop.f32.mrf.mxu0 }
 0x246   :  { %v782_v44 = vadd.f32 %v779_v39, %v777_v40 }
 0x248   :  { %v786_v49 = vmax.f32 %v782_v44, 0.0 }
 0x24a   :  { %v788_v52 = vmax.f32 %v784_v51, %v786_v49 }
 0x24b   :  { %v774_v41 = vpop.f32.mrf.mxu2 }
 0x24c   :  { %v778_v43 = vadd.f32 %v774_v41, %v741_v28 }
 0x24e   :  { %v783_v45 = vadd.f32 %v779_v39, %v778_v43 }
 0x250   :  { %v787_v48 = vmax.f32 %v783_v45, 0.0 }
 0x252   :  { %v789_v50 = vmax.f32 %v785_v47, %v787_v48 }
 0x254   :  { %818 = vmatpush.xpose.msra.mxu0 %v789_v50 }
 0x258   :  { %819 = vmatpush.xpose.msra.mxu0 %v788_v52 }
 0x25b   :  { %820 = vmatmul.f32.vlgmr.msra.gmra.mxu0 %v790_v63 }
 0x263   :  { %823 = vmatmul.f32.gmra.mxu0 %v791_v53 }
 0x2d8   :  { %v821_v55 = vpop.f32.mrf.mxu0 }
 0x2d9   :  { %v822_v57 = vadd.f32 %v821_v55, %v797_v54 }
 0x2db   :  { %v827_v58 = vmax.f32 %v822_v57, 0.0 }
 0x2dd   :  { %v841_v62 = vmul.f32 %v834_v56, %v827_v58 }
 0x2df   :  { %v844_v4 = vsel %vm843_vm2, %v841_v62, 0.0 }
 0x2e0   :  { %v824_v60 = vpop.f32.mrf.mxu0 }
 0x2e1   :  { %v825_v61 = vadd.f32 %v824_v60, %v802_v59 }
 0x2e3   :  { %v828_v0 = vmax.f32 %v825_v61, 0.0 }
 0x2e5   :  { %v842_v3 = vmul.f32 %v839_v1, %v828_v0 }
 0x2e7   :  { %v846_v5 = vsel %vm845_vm3, %v842_v3, 0.0 }
 0x2e8   :  { %v847_v6 = vadd.f32 %v846_v5, %v844_v4 }
 0x2ea   :  { %v848_v7 = vrot.slane %v847_v6, 4 }
 0x2ec   :  { %v849_v8 = vadd.f32 %v848_v7, %v847_v6 }
 0x2ee   :  { %v850_v9 = vrot.slane %v849_v8, 2 }
 0x2f0   :  { %v851_v11 = vadd.f32 %v850_v9, %v849_v8 }
 0x2f2   :  { %v852_v12 = vrot.slane %v851_v11, 1 }
 0x2f4   :  { %v853_v14 = vadd.f32 %v852_v12, %v851_v11 }
 0x2f6   :  { %v861_v15 = vadd.f32 %v860_v13, %v853_v14 }
 0x2f8   :  { %v862_v16 = vmax.f32 %v861_v15, 0.0 }
 0x2fa   :  { %v863_v17 = vsub.f32 0.0, %v862_v16 }
 0x2fc   :  { %v864_v18 = vmul.f32 1.442695, %v863_v17 }
 0x2fe   :  { %948 = vpow2.f32 %v864_v18 }
 0x304   :  { %v949_v19 = vpop.eup %948 }
 0x305   :  { %v866_v20 = vadd.f32 1.0, %v949_v19 }
 0x307   :  { %950 = vrcp.f32 %v866_v20  ;;  %v878_v24 = vand.u32 2147483648, %v866_v20  ;;  %v876_v25 = vand.u32 2147483647, %v866_v20  ;;  %vm872_vm5 = vweird.f32 %v866_v20 }
 0x309   :  { %v879_v27 = vor.u32 1.1754944e-38, %v878_v24  ;;  %vm877_vm8 = vcmp.eq.f32.partialorder %v876_v25, 8.507059e+37 }
 0x30d   :  { %v951_v21 = vpop.eup %950 }
 0x30e   :  { %v868_v22 = vmul.f32 %v951_v21, %v866_v20  ;;  %vm873_vm4 = vweird.f32 %v951_v21 }
 0x30f   :  { %vm874_vm6 = vmor %vm872_vm5, %vm873_vm4 }
 0x310   :  { %v869_v23 = vsub.f32 1.0, %v868_v22 }
 0x312   :  { %v870_v2 = vmul.f32 %v951_v21, %v869_v23 }
 0x314   :  { %v871_v26 = vadd.f32 %v951_v21, %v870_v2 }
 0x316   :  { %v875_v28 = vsel %vm874_vm6, %v951_v21, %v871_v26 }
 0x317   :  { %v880_v29 = vsel %vm877_vm8, %v879_v27, %v875_v28 }
 0x318   :  { %883 = vst.msk [vmem:[#allocation11] sm:$0x1] %vm882_vm7, %v880_v29 }
 0x319   :  { %894 = dma.vmem_to_hbm [thread:$0]  %s890_s18, 16, %s892_s8, [#allocation5]  }
 0x31a   :  { %1078 = dma.done.wait [#allocation5], 16  }
 0x31b   :  { %1079 = vsyncadd [#allocation5], 4294967280 }
 0x31c   :  { %899 = vsyncpa [#allocation4], 1 }
 0x31d   :  { %900 = vsyncpa [#allocation7], 1 }
 0x31e   :  { %901 = vsyncpa [#allocation10], 1 }
 0x31f   :  { %902 = vsyncpa [#allocation5], 1 }

</bundles_post_ra>
